<compile_context>
chip_gen: v7x
topology: tpu7x:2x2x1
jax: 0.10.0
libtpu: 0.0.40
codegen_flags: <defaults>
</compile_context>

<pallas_src>
import jax
import jax.numpy as jnp
from jax.experimental import pallas as pl

LANE = 128  # lane-dense output width for the final store


# ---------------------------------------------------------------------------
# Fused Pallas kernel: concat (as split matmul) + 4-layer MLP
# ---------------------------------------------------------------------------

def _qfunction_kernel(obs_ref, act_ref,
                      w1o_ref, w1a_ref, b1_ref,
                      w2_ref, b2_ref,
                      w3_ref, b3_ref,
                      w4_ref, b4_ref,
                      o_ref):
    # Layer 1: cat([obs, action]) @ W1 + b1  ==  obs @ W1_obs + act @ W1_act + b1
    h = (jnp.dot(obs_ref[...], w1o_ref[...], preferred_element_type=jnp.float32)
         + jnp.dot(act_ref[...], w1a_ref[...], preferred_element_type=jnp.float32)
         + b1_ref[...])
    h = jnp.maximum(h, 0.0)
    # Layer 2
    h = jnp.dot(h, w2_ref[...], preferred_element_type=jnp.float32) + b2_ref[...]
    h = jnp.maximum(h, 0.0)
    # Layer 3
    h = jnp.dot(h, w3_ref[...], preferred_element_type=jnp.float32) + b3_ref[...]
    h = jnp.maximum(h, 0.0)
    # Layer 4 (output padded to 128 lanes for a dense store; col 0 is the real q)
    o_ref[...] = jnp.dot(h, w4_ref[...], preferred_element_type=jnp.float32) + b4_ref[...]


def _full_spec(shape):
    # Whole-array block: block_shape equals the full array dims, index_map -> origin.
    return pl.BlockSpec(shape, lambda: (0,) * len(shape))


def qfunction_forward(params, obs, action):
    """q = trunk(cat([obs, action], -1)); returns (B, 1) float32."""
    assert obs.shape[0] == action.shape[0]
    B, obs_dim = obs.shape
    act_dim = action.shape[1]
    H = params["w2"].shape[0]

    # Split W1 so the concat never materializes.
    w1o = params["w1"][:obs_dim]          # (obs_dim, H)
    w1a = params["w1"][obs_dim:]          # (act_dim, H)

    # Pad the final layer to a lane-dense 128-wide output (zero columns).
    w4p = jnp.zeros((H, LANE), jnp.float32).at[:, :1].set(params["w4"])
    b4p = jnp.zeros((1, LANE), jnp.float32).at[:, :1].set(params["b4"].reshape(1, 1))

    out = pl.pallas_call(
        _qfunction_kernel,
        out_shape=jax.ShapeDtypeStruct((B, LANE), jnp.float32),
        in_specs=[
            _full_spec((B, obs_dim)),
            _full_spec((B, act_dim)),
            _full_spec((obs_dim, H)),
            _full_spec((act_dim, H)),
            _full_spec((1, H)),
            _full_spec((H, H)),
            _full_spec((1, H)),
            _full_spec((H, H)),
            _full_spec((1, H)),
            _full_spec((H, LANE)),
            _full_spec((1, LANE)),
        ],
        out_specs=_full_spec((B, LANE)),
    )(obs, action,
      w1o, w1a, params["b1"].reshape(1, H),
      params["w2"], params["b2"].reshape(1, H),
      params["w3"], params["b3"].reshape(1, H),
      w4p, b4p)

    return out[:, :1]   # valid q-values live in column 0


# ---------------------------------------------------------------------------
# Deterministic parameter init (PyTorch-Linear-style uniform; any deterministic
# init preserves forward semantics)
# ---------------------------------------------------------------------------

def init_params(key, obs_dim, action_dim, hidden_dim):
    in_dim = obs_dim + action_dim
    keys = jax.random.split(key, 8)

    def lin(kw, kb, fan_in, fan_out):
        bound = 1.0 / jnp.sqrt(fan_in)
        w = jax.random.uniform(kw, (fan_in, fan_out), jnp.float32, -bound, bound)
        b = jax.random.uniform(kb, (fan_out,), jnp.float32, -bound, bound)
        return w, b

    w1, b1 = lin(keys[0], keys[1], in_dim, hidden_dim)
    w2, b2 = lin(keys[2], keys[3], hidden_dim, hidden_dim)
    w3, b3 = lin(keys[4], keys[5], hidden_dim, hidden_dim)
    w4, b4 = lin(keys[6], keys[7], hidden_dim, 1)
    return dict(w1=w1, b1=b1, w2=w2, b2=b2, w3=w3, b3=b3, w4=w4, b4=b4)


# ---------------------------------------------------------------------------
# Pure-JAX reference (same math, no Pallas) for a correctness check
# ---------------------------------------------------------------------------

def qfunction_ref(params, obs, action):
    x = jnp.concatenate([obs, action], axis=-1)
    h = jnp.maximum(x @ params["w1"] + params["b1"], 0.0)
    h = jnp.maximum(h @ params["w2"] + params["b2"], 0.0)
    h = jnp.maximum(h @ params["w3"] + params["b3"], 0.0)
    return h @ params["w4"] + params["b4"]


# ---------------------------------------------------------------------------

if __name__ == "__main__":
    batch = 8
    obs_dim = 32
    action_dim = 6
    hidden_dim = 32

    key = jax.random.PRNGKey(0)
    k_obs, k_act, k_par = jax.random.split(key, 3)
    obs = jax.random.normal(k_obs, (batch, obs_dim), jnp.float32)
    action = jax.random.normal(k_act, (batch, action_dim), jnp.float32)

    params = init_params(k_par, obs_dim, action_dim, hidden_dim)

    q = jax.block_until_ready(qfunction_forward(params, obs, action))
    assert q.shape == (batch, 1), q.shape

    q_ref = qfunction_ref(params, obs, action)
    assert jnp.allclose(q, q_ref, atol=1e-5, rtol=1e-5), float(jnp.max(jnp.abs(q - q_ref)))

    print("KERNEL_OK")
</pallas_src>

<mosaic_0001>
module attributes {stable_mosaic.version = 11 : i64} {
  func.func @_qfunction_kernel(%arg0: memref<8x32xf32, #tpu.memory_space<vmem>>, %arg1: memref<8x6xf32, #tpu.memory_space<vmem>>, %arg2: memref<32x32xf32, #tpu.memory_space<vmem>>, %arg3: memref<6x32xf32, #tpu.memory_space<vmem>>, %arg4: memref<1x32xf32, #tpu.memory_space<vmem>>, %arg5: memref<32x32xf32, #tpu.memory_space<vmem>>, %arg6: memref<1x32xf32, #tpu.memory_space<vmem>>, %arg7: memref<32x32xf32, #tpu.memory_space<vmem>>, %arg8: memref<1x32xf32, #tpu.memory_space<vmem>>, %arg9: memref<32x128xf32, #tpu.memory_space<vmem>>, %arg10: memref<1x128xf32, #tpu.memory_space<vmem>>, %arg11: memref<8x128xf32, #tpu.memory_space<vmem>>) attributes {dimension_semantics = [], scalar_prefetch = 0 : i64, scratch_operands = 0 : i64, tpu.core_type = #tpu.core_type<tc>} {
    %c0 = arith.constant 0 : index
    %c0_0 = arith.constant 0 : index
    %0 = vector.load %arg0[%c0, %c0_0] : memref<8x32xf32, #tpu.memory_space<vmem>>, vector<8x32xf32>
    %c0_1 = arith.constant 0 : index
    %c0_2 = arith.constant 0 : index
    %1 = vector.load %arg2[%c0_1, %c0_2] : memref<32x32xf32, #tpu.memory_space<vmem>>, vector<32x32xf32>
    %cst = arith.constant dense<0.000000e+00> : vector<8x32xf32>
    %2 = tpu.matmul %0, %1, %cst {dimension_numbers = #tpu.dot_dimension_numbers<[1], [0], [0], [1], [0, 0, 1, 1], [], []>} : vector<8x32xf32>, vector<32x32xf32>, vector<8x32xf32> -> vector<8x32xf32>
    %c0_3 = arith.constant 0 : index
    %c0_4 = arith.constant 0 : index
    %3 = vector.load %arg1[%c0_3, %c0_4] : memref<8x6xf32, #tpu.memory_space<vmem>>, vector<8x6xf32>
    %c0_5 = arith.constant 0 : index
    %c0_6 = arith.constant 0 : index
    %4 = vector.load %arg3[%c0_5, %c0_6] : memref<6x32xf32, #tpu.memory_space<vmem>>, vector<6x32xf32>
    %cst_7 = arith.constant dense<0.000000e+00> : vector<8x32xf32>
    %5 = tpu.matmul %3, %4, %cst_7 {dimension_numbers = #tpu.dot_dimension_numbers<[1], [0], [0], [1], [0, 0, 1, 1], [], []>} : vector<8x6xf32>, vector<6x32xf32>, vector<8x32xf32> -> vector<8x32xf32>
    %6 = arith.addf %2, %5 : vector<8x32xf32>
    %c0_8 = arith.constant 0 : index
    %c0_9 = arith.constant 0 : index
    %7 = vector.load %arg4[%c0_8, %c0_9] : memref<1x32xf32, #tpu.memory_space<vmem>>, vector<1x32xf32>
    %8 = vector.broadcast %7 : vector<1x32xf32> to vector<8x32xf32>
    %9 = arith.addf %6, %8 : vector<8x32xf32>
    %cst_10 = arith.constant 0.000000e+00 : f32
    %10 = vector.broadcast %cst_10 : f32 to vector<8x32xf32>
    %11 = arith.maximumf %9, %10 : vector<8x32xf32>
    %c0_11 = arith.constant 0 : index
    %c0_12 = arith.constant 0 : index
    %12 = vector.load %arg5[%c0_11, %c0_12] : memref<32x32xf32, #tpu.memory_space<vmem>>, vector<32x32xf32>
    %cst_13 = arith.constant dense<0.000000e+00> : vector<8x32xf32>
    %13 = tpu.matmul %11, %12, %cst_13 {dimension_numbers = #tpu.dot_dimension_numbers<[1], [0], [0], [1], [0, 0, 1, 1], [], []>} : vector<8x32xf32>, vector<32x32xf32>, vector<8x32xf32> -> vector<8x32xf32>
    %c0_14 = arith.constant 0 : index
    %c0_15 = arith.constant 0 : index
    %14 = vector.load %arg6[%c0_14, %c0_15] : memref<1x32xf32, #tpu.memory_space<vmem>>, vector<1x32xf32>
    %15 = vector.broadcast %14 : vector<1x32xf32> to vector<8x32xf32>
    %16 = arith.addf %13, %15 : vector<8x32xf32>
    %cst_16 = arith.constant 0.000000e+00 : f32
    %17 = vector.broadcast %cst_16 : f32 to vector<8x32xf32>
    %18 = arith.maximumf %16, %17 : vector<8x32xf32>
    %c0_17 = arith.constant 0 : index
    %c0_18 = arith.constant 0 : index
    %19 = vector.load %arg7[%c0_17, %c0_18] : memref<32x32xf32, #tpu.memory_space<vmem>>, vector<32x32xf32>
    %cst_19 = arith.constant dense<0.000000e+00> : vector<8x32xf32>
    %20 = tpu.matmul %18, %19, %cst_19 {dimension_numbers = #tpu.dot_dimension_numbers<[1], [0], [0], [1], [0, 0, 1, 1], [], []>} : vector<8x32xf32>, vector<32x32xf32>, vector<8x32xf32> -> vector<8x32xf32>
    %c0_20 = arith.constant 0 : index
    %c0_21 = arith.constant 0 : index
    %21 = vector.load %arg8[%c0_20, %c0_21] : memref<1x32xf32, #tpu.memory_space<vmem>>, vector<1x32xf32>
    %22 = vector.broadcast %21 : vector<1x32xf32> to vector<8x32xf32>
    %23 = arith.addf %20, %22 : vector<8x32xf32>
    %cst_22 = arith.constant 0.000000e+00 : f32
    %24 = vector.broadcast %cst_22 : f32 to vector<8x32xf32>
    %25 = arith.maximumf %23, %24 : vector<8x32xf32>
    %c0_23 = arith.constant 0 : index
    %c0_24 = arith.constant 0 : index
    %26 = vector.load %arg9[%c0_23, %c0_24] : memref<32x128xf32, #tpu.memory_space<vmem>>, vector<32x128xf32>
    %cst_25 = arith.constant dense<0.000000e+00> : vector<8x128xf32>
    %27 = tpu.matmul %25, %26, %cst_25 {dimension_numbers = #tpu.dot_dimension_numbers<[1], [0], [0], [1], [0, 0, 1, 1], [], []>} : vector<8x32xf32>, vector<32x128xf32>, vector<8x128xf32> -> vector<8x128xf32>
    %c0_26 = arith.constant 0 : index
    %c0_27 = arith.constant 0 : index
    %28 = vector.load %arg10[%c0_26, %c0_27] : memref<1x128xf32, #tpu.memory_space<vmem>>, vector<1x128xf32>
    %29 = vector.broadcast %28 : vector<1x128xf32> to vector<8x128xf32>
    %30 = arith.addf %27, %29 : vector<8x128xf32>
    %c0_28 = arith.constant 0 : index
    %c0_29 = arith.constant 0 : index
    %31 = vector.load %arg11[%c0_28, %c0_29] : memref<8x128xf32, #tpu.memory_space<vmem>>, vector<8x128xf32>
    tpu.vector_store %arg11[%c0_28, %c0_29], %30 {strides = array<i32>} : memref<8x128xf32, #tpu.memory_space<vmem>>, vector<8x128xf32>,
    return
  }
}

</mosaic_0001>

<bundles_post_ra>
// kernel: tpu_custom_call.1
= control target key start
LH: loop header
LB: loop body
LE: loop exit
PB: predicated region body
PF: predicated region fallthrough
CT: control target
= control target key end

     0   :  { %16 = vsyncpa [#allocation3], 0  ;;  %s1086_s0 = inlined_call_operand.hbm [shape: f32[8,32], index: 0, kind: input, shape index: {}]   ;;  %s1087_s1 = inlined_call_operand.hbm [shape: f32[8,6], index: 1, kind: input, shape index: {}]   ;;  %s1088_s2 = inlined_call_operand.hbm [shape: f32[32,32], index: 2, kind: input, shape index: {}]   ;;  %s1089_s3 = inlined_call_operand.hbm [shape: f32[6,32], index: 3, kind: input, shape index: {}]   ;;  %s1090_s4 = inlined_call_operand.vmem [shape: f32[1,32], index: 4, kind: input, shape index: {}]   ;;  %s1091_s5 = inlined_call_operand.hbm [shape: f32[32,32], index: 5, kind: input, shape index: {}]   ;;  %s1092_s6 = inlined_call_operand.vmem [shape: f32[1,32], index: 6, kind: input, shape index: {}]   ;;  %s1093_s7 = inlined_call_operand.hbm [shape: f32[32,32], index: 7, kind: input, shape index: {}]   ;;  %s1094_s8 = inlined_call_operand.hbm [shape: f32[1,32], index: 8, kind: input, shape index: {}]   ;;  %s1095_s9 = inlined_call_operand.vmem [shape: f32[32,128], index: 9, kind: input, shape index: {}]   ;;  %s1096_s10 = inlined_call_operand.vmem [shape: f32[1,128], index: 10, kind: input, shape index: {}]   ;;  %s1097_s11 = inlined_call_operand.hbm [shape: f32[8,128], index: 11, kind: output, shape index: {}]  }
   0x1   :  { %17 = vsyncpa [#allocation6], 0 }
   0x2   :  { %18 = vsyncpa [#allocation9], 0 }
   0x3   :  { %19 = vsyncpa [#allocation12], 0 }
   0x4   :  { %20 = vsyncpa [#allocation4], 0  ;;  %s871_s17 = smov [#allocation5]   ;;  %s872_s19 = smov [#allocation8]  }
   0x5   :  { %s37_s18 = sshll.u32 %s871_s17, 4  ;;  %s59_s20 = sshll.u32 %s872_s19, 4  ;;  %s38_s18 = int_to_ptr.vmem [resolvable:$true] %s37_s18  ;;  %s60_s20 = int_to_ptr.vmem [resolvable:$true] %s59_s20 }
   0x6   :  { %s685_s23 = scalar_lea.hbm %s1087_s1, 128 }
   0x7   :  { %p686_p0 = scmp.ne.s32.totalorder %s1087_s1, %s685_s23  ;;  %p689_p1 = scmp.lt.u32.totalorder %s685_s23, %s1087_s1 }
   0x9   :  { %p691_p2 = pnand %p689_p1, %p686_p0 }
   0xb   :  { %694 = shalt.err (!%p691_p2)
}
   0xc   :  { %s695_s28 = scalar_lea.vmem %s38_s18, 128  ;;  %p700_p4 = scmp.lt.s32.totalorder %s38_s18, %s38_s18 }
   0xd   :  { %p696_p3 = scmp.ne.s32.totalorder %s38_s18, %s695_s28  ;;  %p701_p5 = scmp.lt.s32.totalorder %s695_s28, %s695_s28 }
   0xf   :  { %p702_p6 = por %p701_p5, %p700_p4 }
  0x11   :  { %p703_p7 = pnand %p702_p6, %p696_p3 }
  0x13   :  { %706 = shalt.err (!%p703_p7)
}
  0x14   :  { %40 = dma.hbm_to_vmem [thread:$0]  %s1087_s1, 128, %s38_s18, [#allocation6]  }
  0x15   :  { %s707_s14 = scalar_lea.hbm %s1089_s3, 128 }
  0x16   :  { %p708_p8 = scmp.ne.s32.totalorder %s1089_s3, %s707_s14  ;;  %p711_p9 = scmp.lt.u32.totalorder %s707_s14, %s1089_s3 }
  0x18   :  { %p713_p10 = pnand %p711_p9, %p708_p8 }
  0x1a   :  { %716 = shalt.err (!%p713_p10)
}
  0x1b   :  { %s717_s21 = scalar_lea.vmem %s60_s20, 128  ;;  %p722_p12 = scmp.lt.s32.totalorder %s60_s20, %s60_s20 }
  0x1c   :  { %p718_p11 = scmp.ne.s32.totalorder %s60_s20, %s717_s21  ;;  %p723_p13 = scmp.lt.s32.totalorder %s717_s21, %s717_s21 }
  0x1e   :  { %p724_p0 = por %p723_p13, %p722_p12 }
  0x20   :  { %p725_p1 = pnand %p724_p0, %p718_p11 }
  0x22   :  { %728 = shalt.err (!%p725_p1)
}
  0x23   :  { %62 = dma.hbm_to_vmem [thread:$0]  %s1089_s3, 128, %s60_s20, [#allocation9]  }
  0x24   :  { %s873_s22 = smov [#allocation11]   ;;  %s874_s24 = smov [#allocation2]  }
  0x25   :  { %s84_s23 = sshll.u32 %s873_s22, 4  ;;  %s27_s25 = sshll.u32 %s874_s24, 4  ;;  %s85_s23 = int_to_ptr.vmem [resolvable:$true] %s84_s23  ;;  %s28_s25 = int_to_ptr.vmem [resolvable:$true] %s27_s25 }
  0x26   :  { %s729_s28 = scalar_lea.hbm %s1093_s7, 512 }
  0x27   :  { %p730_p2 = scmp.ne.s32.totalorder %s1093_s7, %s729_s28  ;;  %p733_p3 = scmp.lt.u32.totalorder %s729_s28, %s1093_s7 }
  0x29   :  { %p735_p4 = pnand %p733_p3, %p730_p2 }
  0x2b   :  { %738 = shalt.err (!%p735_p4)
}
  0x2c   :  { %s739_s3 = scalar_lea.vmem %s85_s23, 512  ;;  %p744_p6 = scmp.lt.s32.totalorder %s85_s23, %s85_s23 }
  0x2d   :  { %p740_p5 = scmp.ne.s32.totalorder %s85_s23, %s739_s3  ;;  %p745_p7 = scmp.lt.s32.totalorder %s739_s3, %s739_s3 }
  0x2f   :  { %p746_p8 = por %p745_p7, %p744_p6 }
  0x31   :  { %p747_p9 = pnand %p746_p8, %p740_p5 }
  0x33   :  { %750 = shalt.err (!%p747_p9)
}
  0x34   :  { %s875_s20 = smov 128   ;;  %s876_s14 = smov 8  }
  0x35   :  { %90 = dma.hbm_to_vmem [thread:$0]  %s1093_s7, 512, %s85_s23, [#allocation12], %s875_s20, %s875_s20, %s876_s14  }
  0x36   :  { %s751_s21 = scalar_lea.hbm %s1086_s0, 128 }
  0x37   :  { %p752_p10 = scmp.ne.s32.totalorder %s1086_s0, %s751_s21  ;;  %p755_p11 = scmp.lt.u32.totalorder %s751_s21, %s1086_s0 }
  0x39   :  { %p757_p12 = pnand %p755_p11, %p752_p10 }
  0x3b   :  { %760 = shalt.err (!%p757_p12)
}
  0x3c   :  { %s761_s26 = scalar_lea.vmem %s28_s25, 128  ;;  %p766_p0 = scmp.lt.s32.totalorder %s28_s25, %s28_s25 }
  0x3d   :  { %p762_p13 = scmp.ne.s32.totalorder %s28_s25, %s761_s26  ;;  %p767_p1 = scmp.lt.s32.totalorder %s761_s26, %s761_s26 }
  0x3f   :  { %p768_p2 = por %p767_p1, %p766_p0 }
  0x41   :  { %p769_p3 = pnand %p768_p2, %p762_p13 }
  0x43   :  { %772 = shalt.err (!%p769_p3)
}
  0x44   :  { %30 = dma.hbm_to_vmem [thread:$0]  %s1086_s0, 128, %s28_s25, [#allocation3]  }
  0x45   :  { %s877_s27 = smov [#allocation7]   ;;  %s878_s29 = smov [#allocation10]  }
  0x46   :  { %s46_s28 = sshll.u32 %s877_s27, 4  ;;  %s70_s30 = sshll.u32 %s878_s29, 4  ;;  %s47_s28 = int_to_ptr.vmem [resolvable:$true] %s46_s28  ;;  %s995_s30 = int_to_ptr.vmem [resolvable:$true] %s70_s30 }
  0x47   :  { %s773_s3 = scalar_lea.hbm %s1088_s2, 512 }
  0x48   :  { %p774_p4 = scmp.ne.s32.totalorder %s1088_s2, %s773_s3  ;;  %p777_p5 = scmp.lt.u32.totalorder %s773_s3, %s1088_s2 }
  0x4a   :  { %p779_p6 = pnand %p777_p5, %p774_p4 }
  0x4c   :  { %782 = shalt.err (!%p779_p6)
}
  0x4d   :  { %s783_s0 = scalar_lea.vmem %s47_s28, 512  ;;  %p788_p8 = scmp.lt.s32.totalorder %s47_s28, %s47_s28 }
  0x4e   :  { %p784_p7 = scmp.ne.s32.totalorder %s47_s28, %s783_s0  ;;  %p789_p9 = scmp.lt.s32.totalorder %s783_s0, %s783_s0 }
  0x50   :  { %p790_p10 = por %p789_p9, %p788_p8 }
  0x52   :  { %p791_p11 = pnand %p790_p10, %p784_p7 }
  0x54   :  { %794 = shalt.err (!%p791_p11)
}
  0x55   :  { %52 = dma.hbm_to_vmem [thread:$0]  %s1088_s2, 512, %s47_s28, [#allocation6], %s875_s20, %s875_s20, %s876_s14  }
  0x56   :  { %s795_s22 = scalar_lea.hbm %s1091_s5, 512 }
  0x57   :  { %p796_p12 = scmp.ne.s32.totalorder %s1091_s5, %s795_s22  ;;  %p799_p13 = scmp.lt.u32.totalorder %s795_s22, %s1091_s5 }
  0x59   :  { %p801_p0 = pnand %p799_p13, %p796_p12 }
  0x5b   :  { %804 = shalt.err (!%p801_p0)
}
  0x5c   :  { %s805_s27 = scalar_lea.vmem %s995_s30, 512  ;;  %p810_p2 = scmp.lt.s32.totalorder %s995_s30, %s995_s30 }
  0x5d   :  { %p806_p1 = scmp.ne.s32.totalorder %s995_s30, %s805_s27  ;;  %p811_p3 = scmp.lt.s32.totalorder %s805_s27, %s805_s27 }
  0x5f   :  { %p812_p4 = por %p811_p3, %p810_p2 }
  0x61   :  { %p813_p5 = pnand %p812_p4, %p806_p1 }
  0x63   :  { %816 = shalt.err (!%p813_p5)
}
  0x64   :  { %76 = dma.hbm_to_vmem [thread:$0]  %s1091_s5, 512, %s995_s30, [#allocation9], %s875_s20, %s875_s20, %s876_s14  }
  0x65   :  { %s879_s29 = smov [#allocation13]   ;;  %s817_s15 = scalar_lea.hbm %s1094_s8, 16 }
  0x66   :  { %s97_s12 = sshll.u32 %s879_s29, 4  ;;  %p818_p6 = scmp.ne.s32.totalorder %s1094_s8, %s817_s15  ;;  %s98_s12 = int_to_ptr.vmem [resolvable:$true] %s97_s12 }
  0x67   :  { %p821_p7 = scmp.lt.u32.totalorder %s817_s15, %s1094_s8 }
  0x69   :  { %p823_p8 = pnand %p821_p7, %p818_p6 }
  0x6b   :  { %826 = shalt.err (!%p823_p8)
}
  0x6c   :  { %s827_s25 = scalar_lea.vmem %s98_s12, 16  ;;  %s831_s5 = scalar_lea.vmem %s98_s12, 32 }
  0x6d   :  { %p828_p9 = scmp.ne.s32.totalorder %s98_s12, %s827_s25  ;;  %p832_p10 = scmp.lt.s32.totalorder %s98_s12, %s98_s12 }
  0x6e   :  { %p833_p11 = scmp.lt.s32.totalorder %s831_s5, %s827_s25 }
  0x70   :  { %p834_p12 = por %p833_p11, %p832_p10 }
  0x72   :  { %p835_p13 = pnand %p834_p12, %p828_p9 }
  0x74   :  { %838 = shalt.err (!%p835_p13)
}
  0x75   :  { %100 = dma.hbm_to_vmem [thread:$0]  %s1094_s8, 16, %s98_s12, [#allocation12]  }
  0x76   :  { %861 = dma.done.wait [#allocation3], 128  }
  0x77   :  { %862 = vsyncadd [#allocation3], 4294967168 }
  0x78   :  { %863 = dma.done.wait [#allocation6], 640  }
  0x79   :  { %864 = vsyncadd [#allocation6], 4294966656 }
  0x7a   :  { %865 = dma.done.wait [#allocation9], 640  }
  0x7b   :  { %866 = vsyncadd [#allocation9], 4294966656 }
  0x7c   :  { %867 = dma.done.wait [#allocation12], 528  }
  0x7d   :  { %868 = vsyncadd [#allocation12], 4294966768  ;;  %v880_v0 = vmov 0.0|0.0   ;;  %v881_v1 = vmov 0.0   ;;  %vm882_vm0 = vmmov 0   ;;  %vm137_vm1 = vcmask 1045504  }
  0x7e   :  { %648 = vmatprep.subr.bf16.mxu1 %v880_v0  ;;  %599 = vmatprep.subr.mxu0 %v881_v1  ;;  %v127_v2 = vld [vmem:[#allocation7] sm:$0xff]  ;;  %v128_v3 = vld [vmem:[#allocation7 + $0x8] sm:$0xff]  ;;  %v129_v4 = vld [vmem:[#allocation7 + $0x10] sm:$0xff]  ;;  %vm133_vm2 = vcmask 48128   ;;  %vm211_vm3 = vcmask 261120   ;;  %s883_s28 = smov [#allocation14]  }
  0x7f   :  { %601 = vmatprep.mubr.msk.f32.mxu0 %vm882_vm0, %v881_v1  ;;  %612 = vmatprep.mubr.msk.f32.mxu1 %vm882_vm0, %v881_v1  ;;  %v649_v5 = vpack.c.bf16 %v128_v3, %v127_v2  ;;  %v130_v6 = vld [vmem:[#allocation7 + $0x18] sm:$0xff]  ;;  %v132_v7 = vld [vmem:[#allocation8] sm:$0x3f]  ;;  %v126_v10 = vld [vmem:[#allocation2] sm:$0xff]  ;;  %s555_s29 = sshll.u32 %s883_s28, 4  ;;  %s556_s29 = int_to_ptr.vmem [resolvable:$true] %s555_s29 }
  0x80   :  { %v131_v8 = vld [vmem:[#allocation5] sm:$0xff]  ;;  %600 = vmatpush3.msk.msra.mxu0 %vm137_vm1, %v132_v7  ;;  %v652_v9 = vpack.c.bf16 %v130_v6, %v129_v4  ;;  %v294_v11 = vld [vmem:[#allocation10] sm:$0xff]  ;;  %v295_v12 = vld [vmem:[#allocation10 + $0x8] sm:$0xff]  ;;  %p844_p1 = scmp.lt.s32.totalorder %s556_s29, %s556_s29 }
  0x81   :  { %650 = vmatpush3.bf16.msra.mxu1 %v649_v5  ;;  %602 = vmatmul.mubr.msk.f32.vlgmr.msra.gmra.mrb[0].mxu0 %vm133_vm2, %v131_v8  ;;  %v655_v13 = vpack.c.bf16 %v295_v12, %v294_v11  ;;  %v296_v14 = vld [vmem:[#allocation10 + $0x10] sm:$0xff]  ;;  %v297_v15 = vld [vmem:[#allocation10 + $0x18] sm:$0xff]  ;;  %v379_v17 = vld [vmem:[#allocation11] sm:$0xff] }
  0x82   :  { %651 = vmatprep.subr.bf16.mxu1 %v880_v0  ;;  %654 = vmatprep.subr.bf16.mxu0 %v880_v0  ;;  %v658_v16 = vpack.c.bf16 %v297_v15, %v296_v14  ;;  %v380_v18 = vld [vmem:[#allocation11 + $0x8] sm:$0xff]  ;;  %v381_v28 = vld [vmem:[#allocation11 + $0x10] sm:$0xff]  ;;  %v382_v29 = vld [vmem:[#allocation11 + $0x18] sm:$0xff] }
  0x83   :  { %623 = vmatprep.mubr.msk.f32.mxu0 %vm882_vm0, %v881_v1  ;;  %656 = vmatpush3.bf16.msra.mxu0 %v655_v13  ;;  %v661_v19 = vpack.c.bf16 %v380_v18, %v379_v17  ;;  %v570_v23 = vld [vmem:[%s1090_s4] ss:$0 sm:$0xff]  ;;  %v664_v30 = vpack.c.bf16 %v382_v29, %v381_v28  ;;  %v465_v32 = vld [vmem:[%s1095_s9 + $0x8] sm:$0xff]  ;;  %v466_v39 = vld [vmem:[%s1095_s9 + $0x10] sm:$0xff] }
  0x84   :  { %657 = vmatprep.subr.bf16.mxu0 %v880_v0  ;;  %v464_v31 = vld [vmem:[%s1095_s9] sm:$0xff]  ;;  %v467_v40 = vld [vmem:[%s1095_s9 + $0x18] sm:$0xff]  ;;  %s839_s9 = scalar_lea.vmem %s556_s29, 128 }
  0x85   :  { %653 = vmatpush3.bf16.msra.mxu1 %v652_v9  ;;  %v667_v33 = vpack.c.bf16 %v465_v32, %v464_v31  ;;  %v571_v34 = vld [vmem:[%s1092_s6] ss:$0 sm:$0xff]  ;;  %v670_v41 = vpack.c.bf16 %v467_v40, %v466_v39  ;;  %v573_v42 = vld [vmem:[#allocation13] ss:$0 sm:$0xff]  ;;  %p840_p0 = scmp.ne.s32.totalorder %s556_s29, %s839_s9  ;;  %p845_p2 = scmp.lt.s32.totalorder %s839_s9, %s839_s9 }
  0x86   :  { %660 = vmatprep.subr.bf16.mxu1 %v880_v0  ;;  %v575_v47 = vld [vmem:[%s1096_s10] ss:$0 sm:$0xff] }
  0x87   :  { %659 = vmatpush3.bf16.msra.mxu0 %v658_v16  ;;  %p846_p3 = por %p845_p2, %p844_p1 }
  0x88   :  { %613 = vmatmul.mubr.msk.f32.vlgmr.msra.gmra.mrb[0].mxu1 %vm211_vm3, %v126_v10  ;;  %666 = vmatprep.subr.bf16.mxu0 %v880_v0 }
  0x89   :  { %634 = vmatprep.mubr.msk.f32.mxu1 %vm882_vm0, %v881_v1  ;;  %662 = vmatpush3.bf16.msra.mxu1 %v661_v19  ;;  %p847_p4 = pnand %p846_p3, %p840_p0 }
  0x8a   :  { %663 = vmatprep.subr.bf16.mxu1 %v880_v0 }
  0x8d   :  { %665 = vmatpush3.bf16.msra.mxu1 %v664_v30 }
 0x154   :  { %v207_v20 = vpop.f32.mrb[0].mxu0 }
 0x155   :  { %v603_v21 = vpop.f32.mrb[1].mxu0 }
 0x15b   :  { %v281_v22 = vpop.f32.mrb[0].mxu1 }
 0x15c   :  { %v282_v24 = vadd.f32 %v281_v22, %v207_v20  ;;  %v614_v25 = vpop.f32.mrb[1].mxu1 }
 0x15e   :  { %v292_v26 = vadd.f32 %v570_v23, %v282_v24 }
 0x160   :  { %v293_v27 = vmax.f32 %v292_v26, 0.0 }
 0x162   :  { %624 = vmatmul.mubr.msk.f32.vlgmr.msra.gmra.mrb[2].mxu0 %vm211_vm3, %v293_v27 }
 0x163   :  { %645 = vmatprep.mubr.msk.f32.mxu0 %vm882_vm0, %v881_v1  ;;  %668 = vmatpush3.bf16.msra.mxu0 %v667_v33 }
 0x164   :  { %669 = vmatprep.subr.bf16.mxu0 %v880_v0 }
 0x167   :  { %671 = vmatpush3.bf16.msra.mxu0 %v670_v41 }
 0x235   :  { %v374_v35 = vpop.f32.mrb[2].mxu0 }
 0x236   :  { %v375_v36 = vadd.f32 %v571_v34, %v374_v35  ;;  %v625_v37 = vpop.f32.mrb[3].mxu0 }
 0x238   :  { %v378_v38 = vmax.f32 %v375_v36, 0.0 }
 0x23a   :  { %635 = vmatmul.mubr.msk.f32.vlgmr.msra.gmra.mrb[2].mxu1 %vm211_vm3, %v378_v38 }
 0x30d   :  { %v459_v43 = vpop.f32.mrb[2].mxu1 }
 0x30e   :  { %v460_v44 = vadd.f32 %v573_v42, %v459_v43  ;;  %v636_v45 = vpop.f32.mrb[3].mxu1 }
 0x310   :  { %v463_v46 = vmax.f32 %v460_v44, 0.0 }
 0x312   :  { %646 = vmatmul.mubr.msk.f32.vlgmr.msra.gmra.mrb[4].mxu0 %vm211_vm3, %v463_v46 }
 0x3e5   :  { %v544_v48 = vpop.f32.mrb[4].mxu0 }
 0x3e6   :  { %v545_v49 = vadd.f32 %v575_v47, %v544_v48  ;;  %v647_v50 = vpop.f32.mrb[5].mxu0 }
 0x3e8   :  { %548 = vst [vmem:[#allocation14] sm:$0xff] %v545_v49 }
 0x3e9   :  { %850 = shalt.err (!%p847_p4)
}
 0x3ea   :  { %s851_s3 = scalar_lea.hbm %s1097_s11, 128 }
 0x3eb   :  { %p852_p5 = scmp.ne.s32.totalorder %s1097_s11, %s851_s3  ;;  %p855_p6 = scmp.lt.u32.totalorder %s851_s3, %s1097_s11 }
 0x3ed   :  { %p857_p7 = pnand %p855_p6, %p852_p5 }
 0x3ef   :  { %860 = shalt.err (!%p857_p7)
}
 0x3f0   :  { %558 = dma.vmem_to_hbm [thread:$0]  %s556_s29, 128, %s1097_s11, [#allocation4]  }
 0x3f1   :  { %869 = dma.done.wait [#allocation4], 128  }
 0x3f2   :  { %870 = vsyncadd [#allocation4], 4294967168 }
 0x3f3   :  { %562 = vsyncpa [#allocation3], 1 }
 0x3f4   :  { %563 = vsyncpa [#allocation6], 1 }
 0x3f5   :  { %564 = vsyncpa [#allocation9], 1 }
 0x3f6   :  { %565 = vsyncpa [#allocation12], 1 }
 0x3f7   :  { %566 = vsyncpa [#allocation4], 1 }

</bundles_post_ra>
